<compile_context>
chip_gen: v7x
topology: tpu7x:2x2x1
jax: 0.10.0
libtpu: 0.0.40
codegen_flags: <defaults>
</compile_context>

<pallas_src>
import jax
import jax.numpy as jnp
from jax import lax
from jax.experimental import pallas as pl
from jax.experimental.pallas import tpu as pltpu

BN_EPS = 1e-5


def _round_up(x, m):
    return (x + m - 1) // m * m


# ---------------- Pass 1: tiled conv-matmul + per-tile partial BN statistics ----------------
def _matmul_stats_kernel(p_ref, w_ref, y_ref, stats_ref):
    # p_ref: (TM, Kp) bf16, w_ref: (Kp, Cp) bf16, y_ref: (TM, Cp) f32, stats_ref: (1, 2, Cp) f32
    y = jnp.dot(p_ref[...], w_ref[...], preferred_element_type=jnp.float32)
    y_ref[...] = y
    s = jnp.sum(y, axis=0, keepdims=True)           # (1, Cp)
    sq = jnp.sum(y * y, axis=0, keepdims=True)      # (1, Cp)
    stats_ref[...] = jnp.concatenate([s, sq], axis=0)[None, :, :]


# ---------------- Pass 2: per-element affine (y - mean)/std * gamma + beta == y*scale + shift ----------------
def _bn_apply_kernel(y_ref, scale_ref, shift_ref, out_ref):
    out_ref[...] = y_ref[...] * scale_ref[...] + shift_ref[...]


def _im2col_nhwc(x_nhwc, stride):
    """x: (N, H, W, C) -> patches (N*Ho*Wo, 9*C) with K ordered as (kh, kw, c)."""
    N, H, W, C = x_nhwc.shape
    xp = jnp.pad(x_nhwc, ((0, 0), (1, 1), (1, 1), (0, 0)))
    Ho = (H + 2 - 3) // stride + 1
    Wo = (W + 2 - 3) // stride + 1
    cols = []
    for kh in range(3):
        for kw in range(3):
            cols.append(xp[:, kh:kh + (Ho - 1) * stride + 1:stride,
                              kw:kw + (Wo - 1) * stride + 1:stride, :])   # (N, Ho, Wo, C)
    patches = jnp.stack(cols, axis=3)                 # (N, Ho, Wo, 9, C)
    patches = patches.reshape(N * Ho * Wo, 9 * C)
    return patches, Ho, Wo


def pre_conv_forward(x_nchw, conv_weight, bn_gamma, bn_beta, *, stride):
    """x_nchw: (N, Cin, H, W); conv_weight: (Cout, Cin, 3, 3); returns (N, Cout, Ho, Wo) float32."""
    N, Cin, H, W = x_nchw.shape
    Cout = conv_weight.shape[0]

    # ---- NHWC internal layout, bf16 MXU inputs ----
    x_nhwc = jnp.transpose(x_nchw, (0, 2, 3, 1)).astype(jnp.bfloat16)
    patches, Ho, Wo = _im2col_nhwc(x_nhwc, stride)    # (M, K) bf16
    # TODO(synk): a fully in-kernel 3x3 conv (9 shifted matmuls on NHWC tiles) would avoid the 9x
    # im2col materialization in HBM; im2col is kept here but built in bf16 to halve that traffic.
    M, K = patches.shape

    # ---- lane/sublane-aligned padding (padded rows/cols are zero -> BN stats stay correct) ----
    Kp = _round_up(K, 128)
    Cp = _round_up(Cout, 128)
    tm = min(512, _round_up(M, 128))
    Mp = _round_up(M, tm)
    n_tiles = Mp // tm

    patches = jnp.pad(patches, ((0, Mp - M), (0, Kp - K)))
    # weight: (Cout, Cin, 3, 3) -> (kh, kw, Cin, Cout) to match the patch K ordering
    w_mat = jnp.transpose(conv_weight, (2, 3, 1, 0)).reshape(K, Cout).astype(jnp.bfloat16)
    w_mat = jnp.pad(w_mat, ((0, Kp - K), (0, Cp - Cout)))

    # ---- pass 1: conv as tiled matmul + per-tile partial sums ----
    y, stats = pl.pallas_call(
        _matmul_stats_kernel,
        out_shape=(jax.ShapeDtypeStruct((Mp, Cp), jnp.float32),
                   jax.ShapeDtypeStruct((n_tiles, 2, Cp), jnp.float32)),
        grid=(n_tiles,),
        in_specs=[
            pl.BlockSpec((tm, Kp), lambda i: (i, 0)),
            pl.BlockSpec((Kp, Cp), lambda i: (0, 0)),
        ],
        out_specs=(
            pl.BlockSpec((tm, Cp), lambda i: (i, 0)),
            pl.BlockSpec((1, 2, Cp), lambda i: (i, 0, 0)),
        ),
        compiler_params=pltpu.CompilerParams(dimension_semantics=("parallel",)),
    )(patches, w_mat)

    # ---- tiny per-channel reduction + BN affine coefficients (plain JAX, O(Cout)) ----
    total = jnp.sum(stats, axis=0)                     # (2, Cp)
    mean = total[0] / M                                # divide by TRUE M (padded rows are zero)
    var = jnp.maximum(total[1] / M - mean * mean, 0.0)
    inv_std = lax.rsqrt(var + BN_EPS)
    gamma_p = jnp.pad(bn_gamma.astype(jnp.float32), (0, Cp - Cout))
    beta_p = jnp.pad(bn_beta.astype(jnp.float32), (0, Cp - Cout))
    scale = (gamma_p * inv_std).reshape(1, Cp)
    shift = (beta_p - mean * gamma_p * inv_std).reshape(1, Cp)

    # ---- pass 2: normalize ----
    out_flat = pl.pallas_call(
        _bn_apply_kernel,
        out_shape=jax.ShapeDtypeStruct((Mp, Cp), jnp.float32),
        grid=(n_tiles,),
        in_specs=[
            pl.BlockSpec((tm, Cp), lambda i: (i, 0)),
            pl.BlockSpec((1, Cp), lambda i: (0, 0)),
            pl.BlockSpec((1, Cp), lambda i: (0, 0)),
        ],
        out_specs=pl.BlockSpec((tm, Cp), lambda i: (i, 0)),
        compiler_params=pltpu.CompilerParams(dimension_semantics=("parallel",)),
    )(y, scale, shift)

    out = out_flat[:M, :Cout].reshape(N, Ho, Wo, Cout)
    return jnp.transpose(out, (0, 3, 1, 2))            # back to NCHW (PyTorch convention)


def _reference(x, w, gamma, beta, stride, in_dtype=jnp.float32):
    """Conv (optionally with bf16-cast inputs, f32 accumulation) + training-mode BatchNorm."""
    y = lax.conv_general_dilated(
        x.astype(in_dtype), w.astype(in_dtype),
        window_strides=(stride, stride), padding=((1, 1), (1, 1)),
        dimension_numbers=("NCHW", "OIHW", "NCHW"),
        preferred_element_type=jnp.float32)
    mean = jnp.mean(y, axis=(0, 2, 3), keepdims=True)
    var = jnp.mean((y - mean) ** 2, axis=(0, 2, 3), keepdims=True)
    g = gamma.reshape(1, -1, 1, 1)
    b = beta.reshape(1, -1, 1, 1)
    return (y - mean) * lax.rsqrt(var + BN_EPS) * g + b


if __name__ == "__main__":
    # small shapes: batch=2, in_channel=4, out_channel=8, spatial=16, stride=2
    N, Cin, Cout, H, W, stride = 2, 4, 8, 16, 16, 2

    key = jax.random.PRNGKey(0)
    kx, kw, kg, kb = jax.random.split(key, 4)
    x = jax.random.normal(kx, (N, Cin, H, W), dtype=jnp.float32)
    conv_w = jax.random.normal(kw, (Cout, Cin, 3, 3), dtype=jnp.float32) * 0.1
    bn_gamma = 1.0 + 0.1 * jax.random.normal(kg, (Cout,), dtype=jnp.float32)
    bn_beta = 0.1 * jax.random.normal(kb, (Cout,), dtype=jnp.float32)

    out = pre_conv_forward(x, conv_w, bn_gamma, bn_beta, stride=stride)
    out = jax.block_until_ready(out)

    assert out.shape == (N, Cout, H // stride, W // stride)

    # strict check vs a reference that also feeds the conv bf16 inputs (same MXU precision)
    ref_bf16 = _reference(x, conv_w, bn_gamma, bn_beta, stride, in_dtype=jnp.bfloat16)
    err_strict = jnp.max(jnp.abs(out - ref_bf16))
    assert err_strict < 2e-3, f"strict err {err_strict}"

    # loose check vs the exact float32 module semantics (bf16 input rounding only)
    ref_f32 = _reference(x, conv_w, bn_gamma, bn_beta, stride, in_dtype=jnp.float32)
    err_loose = jnp.max(jnp.abs(out - ref_f32))
    assert err_loose < 5e-2, f"loose err {err_loose}"

    print("KERNEL_OK")
</pallas_src>

<mosaic_0001>
module attributes {stable_mosaic.version = 11 : i64} {
  func.func @_matmul_stats_kernel(%arg0: i32, %arg1: memref<128x128xbf16, #tpu.memory_space<vmem>>, %arg2: memref<128x128xbf16, #tpu.memory_space<vmem>>, %arg3: memref<128x128xf32, #tpu.memory_space<vmem>>, %arg4: memref<1x2x128xf32, #tpu.memory_space<vmem>>) attributes {dimension_semantics = [#tpu.dimension_semantics<parallel>], iteration_bounds = array<i64: 1>, scalar_prefetch = 0 : i64, scratch_operands = 0 : i64, tpu.core_type = #tpu.core_type<tc>, window_params = [{transform_indices = @transform_0, window_bounds = array<i64: 128, 128>}, {pipeline_mode = #tpu.pipeline_mode<synchronous>, transform_indices = @transform_1, window_bounds = array<i64: 128, 128>}, {transform_indices = @transform_2, window_bounds = array<i64: 128, 128>}, {transform_indices = @transform_3, window_bounds = array<i64: 1, 2, 128>}]} {
    %c0 = arith.constant 0 : index
    %c0_0 = arith.constant 0 : index
    %0 = vector.load %arg1[%c0, %c0_0] : memref<128x128xbf16, #tpu.memory_space<vmem>>, vector<128x128xbf16>
    %c0_1 = arith.constant 0 : index
    %c0_2 = arith.constant 0 : index
    %1 = vector.load %arg2[%c0_1, %c0_2] : memref<128x128xbf16, #tpu.memory_space<vmem>>, vector<128x128xbf16>
    %cst = arith.constant dense<0.000000e+00> : vector<128x128xf32>
    %2 = tpu.matmul %0, %1, %cst {dimension_numbers = #tpu.dot_dimension_numbers<[1], [0], [0], [1], [0, 0, 1, 1], [], []>} : vector<128x128xbf16>, vector<128x128xbf16>, vector<128x128xf32> -> vector<128x128xf32>
    %c0_3 = arith.constant 0 : index
    %c0_4 = arith.constant 0 : index
    %3 = vector.load %arg3[%c0_3, %c0_4] : memref<128x128xf32, #tpu.memory_space<vmem>>, vector<128x128xf32>
    tpu.vector_store %arg3[%c0_3, %c0_4], %2 {strides = array<i32>} : memref<128x128xf32, #tpu.memory_space<vmem>>, vector<128x128xf32>,
    %cst_5 = arith.constant dense<0.000000e+00> : vector<128xf32>
    %4 = vector.multi_reduction <add>, %2, %cst_5 [0] : vector<128x128xf32> to vector<128xf32>
    %5 = vector.shape_cast %4 : vector<128xf32> to vector<1x128xf32>
    %6 = arith.mulf %2, %2 : vector<128x128xf32>
    %cst_6 = arith.constant dense<0.000000e+00> : vector<128xf32>
    %7 = vector.multi_reduction <add>, %6, %cst_6 [0] : vector<128x128xf32> to vector<128xf32>
    %8 = vector.shape_cast %7 : vector<128xf32> to vector<1x128xf32>
    %9 = tpu.concatenate %5, %8 in 0 : vector<1x128xf32>, vector<1x128xf32> -> vector<2x128xf32>
    %10 = vector.shape_cast %9 : vector<2x128xf32> to vector<1x2x128xf32>
    %c0_7 = arith.constant 0 : index
    %c0_8 = arith.constant 0 : index
    %c0_9 = arith.constant 0 : index
    %11 = vector.load %arg4[%c0_7, %c0_8, %c0_9] : memref<1x2x128xf32, #tpu.memory_space<vmem>>, vector<1x2x128xf32>
    tpu.vector_store %arg4[%c0_7, %c0_8, %c0_9], %10 {strides = array<i32>} : memref<1x2x128xf32, #tpu.memory_space<vmem>>, vector<1x2x128xf32>,
    return
  }
  func.func @transform_0(%arg0: i32) -> (i32, i32) {
    %c0_i32 = arith.constant 0 : i32
    %c0_i32_0 = arith.constant 0 : i32
    return %arg0, %c0_i32 : i32, i32
  }
  func.func @transform_1(%arg0: i32) -> (i32, i32) {
    %c0_i32 = arith.constant 0 : i32
    %c0_i32_0 = arith.constant 0 : i32
    %c0_i32_1 = arith.constant 0 : i32
    return %c0_i32, %c0_i32_0 : i32, i32
  }
  func.func @transform_2(%arg0: i32) -> (i32, i32) {
    %c0_i32 = arith.constant 0 : i32
    %c0_i32_0 = arith.constant 0 : i32
    return %arg0, %c0_i32 : i32, i32
  }
  func.func @transform_3(%arg0: i32) -> (i32, i32, i32) {
    %c0_i32 = arith.constant 0 : i32
    %c0_i32_0 = arith.constant 0 : i32
    %c0_i32_1 = arith.constant 0 : i32
    return %arg0, %c0_i32, %c0_i32_0 : i32, i32, i32
  }
}

</mosaic_0001>

<bundles_post_ra>
// kernel: tpu_custom_call.1
= control target key start
LH: loop header
LB: loop body
LE: loop exit
PB: predicated region body
PF: predicated region fallthrough
CT: control target
= control target key end

     0   :  { %9 = vsyncpa [#allocation3], 0  ;;  %s672_s0 = inlined_call_operand.hbm [shape: bf16[128,128], index: 0, kind: input, shape index: {}]   ;;  %s673_s1 = inlined_call_operand.hbm [shape: bf16[128,128], index: 1, kind: input, shape index: {}]   ;;  %s674_s2 = inlined_call_operand.hbm [shape: f32[128,128], index: 2, kind: output, shape index: {0}]   ;;  %s675_s3 = inlined_call_operand.hbm [shape: f32[1,2,128], index: 3, kind: output, shape index: {1}]  }
   0x1   :  { %10 = vsyncpa [#allocation6], 0 }
   0x2   :  { %11 = vsyncpa [#allocation4], 0 }
   0x3   :  { %12 = vsyncpa [#allocation9], 0  ;;  %s578_s12 = smov [#allocation2]   ;;  %s482_s16 = scalar_lea.hbm %s672_s0, 1024 }
   0x4   :  { %s18_s13 = sshll.u32 %s578_s12, 4  ;;  %p483_p0 = scmp.ne.s32.totalorder %s672_s0, %s482_s16  ;;  %s19_s13 = int_to_ptr.vmem [resolvable:$true] %s18_s13 }
   0x5   :  { %p486_p1 = scmp.lt.u32.totalorder %s482_s16, %s672_s0 }
   0x7   :  { %p488_p2 = pnand %p486_p1, %p483_p0 }
   0x9   :  { %491 = shalt.err (!%p488_p2)
}
   0xa   :  { %s492_s21 = scalar_lea.vmem %s19_s13, 1024  ;;  %p497_p4 = scmp.lt.s32.totalorder %s19_s13, %s19_s13 }
   0xb   :  { %p493_p3 = scmp.ne.s32.totalorder %s19_s13, %s492_s21  ;;  %p498_p5 = scmp.lt.s32.totalorder %s492_s21, %s492_s21 }
   0xd   :  { %p499_p6 = por %p498_p5, %p497_p4 }
   0xf   :  { %p500_p7 = pnand %p499_p6, %p493_p3 }
  0x11   :  { %503 = shalt.err (!%p500_p7)
}
  0x12   :  { %s579_s22 = smov 64   ;;  %s580_s23 = smov 4  }
  0x13   :  { %24 = dma.hbm_to_vmem [thread:$0]  %s672_s0, 1024, %s19_s13, [#allocation3], %s579_s22, %s579_s22, %s580_s23  }
  0x14   :  { %s581_s26 = smov [#allocation5]   ;;  %s504_s30 = scalar_lea.hbm %s673_s1, 1024 }
  0x15   :  { %s30_s27 = sshll.u32 %s581_s26, 4  ;;  %p505_p8 = scmp.ne.s32.totalorder %s673_s1, %s504_s30  ;;  %s31_s27 = int_to_ptr.vmem [resolvable:$true] %s30_s27 }
  0x16   :  { %p508_p9 = scmp.lt.u32.totalorder %s504_s30, %s673_s1 }
  0x18   :  { %p510_p10 = pnand %p508_p9, %p505_p8 }
  0x1a   :  { %513 = shalt.err (!%p510_p10)
}
  0x1b   :  { %s514_s8 = scalar_lea.vmem %s31_s27, 1024  ;;  %p519_p12 = scmp.lt.s32.totalorder %s31_s27, %s31_s27 }
  0x1c   :  { %p515_p11 = scmp.ne.s32.totalorder %s31_s27, %s514_s8  ;;  %p520_p13 = scmp.lt.s32.totalorder %s514_s8, %s514_s8 }
  0x1e   :  { %p521_p0 = por %p520_p13, %p519_p12 }
  0x20   :  { %p522_p1 = pnand %p521_p0, %p515_p11 }
  0x22   :  { %525 = shalt.err (!%p522_p1)
}
  0x23   :  { %36 = dma.hbm_to_vmem [thread:$0]  %s673_s1, 1024, %s31_s27, [#allocation6], %s579_s22, %s579_s22, %s580_s23  }
  0x24   :  { %570 = dma.done.wait [#allocation3], 1024  }
  0x25   :  { %571 = vsyncadd [#allocation3], 4294966272 }
  0x26   :  { %572 = dma.done.wait [#allocation6], 1024  }
  0x27   :  { %573 = vsyncadd [#allocation6], 4294966272  ;;  %v466_v0 = vld [vmem:[#allocation5] sm:$0xff]   ;;  %v467_v1 = vld [vmem:[#allocation5 + $0x8] sm:$0xff]   ;;  %s582_s1 = smov [#allocation7]  }
  0x28   :  { %410 = vmatprep.subr.bf16.mxu0 %v466_v0  ;;  %442 = vmatprep.subr.bf16.mxu1 %v466_v0  ;;  %v468_v2 = vld [vmem:[#allocation5 + $0x10] sm:$0xff]   ;;  %v469_v3 = vld [vmem:[#allocation5 + $0x18] sm:$0xff]   ;;  %v474_v4 = vld [vmem:[#allocation2] sm:$0xff]   ;;  %s351_s10 = sshll.u32 %s582_s1, 4  ;;  %s352_s10 = int_to_ptr.vmem [resolvable:$true] %s351_s10 }
  0x29   :  { %411 = vmatpush3.bf16.msra.mxu0 %v466_v0  ;;  %450 = vmatpush3.bf16.msra.mxu1 %v466_v0  ;;  %v470_v5 = vld [vmem:[#allocation5 + $0x20] sm:$0xff]   ;;  %v471_v7 = vld [vmem:[#allocation5 + $0x28] sm:$0xff]   ;;  %v472_v8 = vld [vmem:[#allocation5 + $0x30] sm:$0xff]   ;;  %s526_s11 = scalar_lea.vmem %s352_s10, 2048  ;;  %p531_p3 = scmp.lt.s32.totalorder %s352_s10, %s352_s10 }
  0x2a   :  { %412 = vmatprep.subr.bf16.mxu0 %v467_v1  ;;  %443 = vmatprep.subr.bf16.mxu1 %v467_v1  ;;  %v478_v6 = vld [vmem:[#allocation2 + $0x20] sm:$0xff]   ;;  %v473_v9 = vld [vmem:[#allocation5 + $0x38] sm:$0xff]   ;;  %v475_v10 = vld [vmem:[#allocation2 + $0x8] sm:$0xff]   ;;  %p527_p2 = scmp.ne.s32.totalorder %s352_s10, %s526_s11  ;;  %p532_p4 = scmp.lt.s32.totalorder %s526_s11, %s526_s11 }
  0x2b   :  { %426 = vmatprep.mubr.bf16.mxu0 %v474_v4  ;;  %434 = vmatprep.mubr.bf16.mxu1 %v478_v6  ;;  %v479_v11 = vld [vmem:[#allocation2 + $0x28] sm:$0xff]   ;;  %v476_v12 = vld [vmem:[#allocation2 + $0x10] sm:$0xff]   ;;  %v477_v14 = vld [vmem:[#allocation2 + $0x18] sm:$0xff]  }
  0x2c   :  { %v480_v13 = vld [vmem:[#allocation2 + $0x30] sm:$0xff]   ;;  %v481_v15 = vld [vmem:[#allocation2 + $0x38] sm:$0xff]   ;;  %p533_p5 = por %p532_p4, %p531_p3 }
  0x2d   :  { %413 = vmatpush3.bf16.msra.mxu0 %v467_v1  ;;  %451 = vmatpush3.bf16.msra.mxu1 %v467_v1 }
  0x2e   :  { %414 = vmatprep.subr.bf16.mxu0 %v468_v2  ;;  %444 = vmatprep.subr.bf16.mxu1 %v468_v2  ;;  %p534_p6 = pnand %p533_p5, %p527_p2 }
  0x31   :  { %415 = vmatpush3.bf16.msra.mxu0 %v468_v2  ;;  %452 = vmatpush3.bf16.msra.mxu1 %v468_v2 }
  0x32   :  { %416 = vmatprep.subr.bf16.mxu0 %v469_v3  ;;  %445 = vmatprep.subr.bf16.mxu1 %v469_v3 }
  0x35   :  { %417 = vmatpush3.bf16.msra.mxu0 %v469_v3  ;;  %453 = vmatpush3.bf16.msra.mxu1 %v469_v3 }
  0x36   :  { %418 = vmatprep.subr.bf16.mxu0 %v470_v5  ;;  %446 = vmatprep.subr.bf16.mxu1 %v470_v5 }
  0x39   :  { %419 = vmatpush3.bf16.msra.mxu0 %v470_v5  ;;  %454 = vmatpush3.bf16.msra.mxu1 %v470_v5 }
  0x3a   :  { %420 = vmatprep.subr.bf16.mxu0 %v471_v7  ;;  %447 = vmatprep.subr.bf16.mxu1 %v471_v7 }
  0x3d   :  { %421 = vmatpush3.bf16.msra.mxu0 %v471_v7  ;;  %455 = vmatpush3.bf16.msra.mxu1 %v471_v7 }
  0x3e   :  { %422 = vmatprep.subr.bf16.mxu0 %v472_v8  ;;  %448 = vmatprep.subr.bf16.mxu1 %v472_v8 }
  0x41   :  { %423 = vmatpush3.bf16.msra.mxu0 %v472_v8  ;;  %456 = vmatpush3.bf16.msra.mxu1 %v472_v8 }
  0x42   :  { %424 = vmatprep.subr.bf16.mxu0 %v473_v9  ;;  %449 = vmatprep.subr.bf16.mxu1 %v473_v9 }
  0x45   :  { %425 = vmatpush3.bf16.msra.mxu0 %v473_v9  ;;  %457 = vmatpush3.bf16.msra.mxu1 %v473_v9 }
  0x48   :  { %427 = vmatmul.mubr.bf16.vlgmr.msra.gmra.mrb[0].mxu0 %v475_v10  ;;  %435 = vmatmul.mubr.bf16.vlgmr.msra.gmra.mrb[0].mxu1 %v479_v11 }
  0x49   :  { %430 = vmatprep.mubr.bf16.mxu0 %v476_v12  ;;  %438 = vmatprep.mubr.bf16.mxu1 %v480_v13 }
  0x50   :  { %431 = vmatmul.mubr.bf16.gmra.mrb[4].mxu0 %v477_v14  ;;  %439 = vmatmul.mubr.bf16.gmra.mrb[4].mxu1 %v481_v15 }
 0x11b   :  { %v428_v16 = vpop.f32.mrb[0].mxu0  ;;  %v630_v17 = vpop.f32.mrb[0].mxu1 }
 0x11c   :  { %271 = vst [vmem:[#allocation7 + $0x10] sm:$0xff] %v428_v16  ;;  %v206_v18 = vpop.f32.mrb[1].mxu0  ;;  %279 = vst [vmem:[#allocation7 + $0x50] sm:$0xff] %v630_v17  ;;  %v633_v19 = vpop.f32.mrb[1].mxu1  ;;  %v308_v27 = vmul.f32 %v428_v16, %v428_v16 }
 0x11d   :  { %269 = vst [vmem:[#allocation7] sm:$0xff] %v206_v18  ;;  %v429_v20 = vpop.f32.mrb[2].mxu0  ;;  %277 = vst [vmem:[#allocation7 + $0x40] sm:$0xff] %v633_v19  ;;  %v636_v21 = vpop.f32.mrb[2].mxu1  ;;  %v306_v24 = vmul.f32 %v206_v18, %v206_v18 }
 0x11e   :  { %272 = vst [vmem:[#allocation7 + $0x18] sm:$0xff] %v429_v20  ;;  %v209_v22 = vpop.f32.mrb[3].mxu0  ;;  %280 = vst [vmem:[#allocation7 + $0x58] sm:$0xff] %v636_v21  ;;  %v241_v23 = vpop.f32.mrb[3].mxu1  ;;  %v309_v30 = vmul.f32 %v429_v20, %v429_v20 }
 0x11f   :  { %270 = vst [vmem:[#allocation7 + $0x8] sm:$0xff] %v209_v22  ;;  %v285_v25 = vadd.f32 %v209_v22, %v206_v18  ;;  %v307_v26 = vmul.f32 %v209_v22, %v209_v22  ;;  %278 = vst [vmem:[#allocation7 + $0x48] sm:$0xff] %v241_v23 }
 0x121   :  { %v286_v28 = vadd.f32 %v428_v16, %v285_v25  ;;  %v322_v29 = vadd.f32 %v307_v26, %v306_v24 }
 0x123   :  { %v323_v31 = vadd.f32 %v322_v29, %v308_v27  ;;  %v432_v32 = vpop.f32.mrb[4].mxu0  ;;  %v287_v33 = vadd.f32 %v429_v20, %v286_v28  ;;  %v440_v34 = vpop.f32.mrb[4].mxu1 }
 0x124   :  { %275 = vst [vmem:[#allocation7 + $0x30] sm:$0xff] %v432_v32  ;;  %v222_v35 = vpop.f32.mrb[5].mxu0  ;;  %283 = vst [vmem:[#allocation7 + $0x70] sm:$0xff] %v440_v34  ;;  %v254_v36 = vpop.f32.mrb[5].mxu1 }
 0x125   :  { %273 = vst [vmem:[#allocation7 + $0x20] sm:$0xff] %v222_v35  ;;  %v288_v37 = vadd.f32 %v287_v33, %v222_v35  ;;  %v310_v38 = vmul.f32 %v222_v35, %v222_v35  ;;  %v324_v39 = vadd.f32 %v323_v31, %v309_v30  ;;  %v433_v40 = vpop.f32.mrb[6].mxu0  ;;  %281 = vst [vmem:[#allocation7 + $0x60] sm:$0xff] %v254_v36  ;;  %v441_v41 = vpop.f32.mrb[6].mxu1 }
 0x126   :  { %276 = vst [vmem:[#allocation7 + $0x38] sm:$0xff] %v433_v40  ;;  %v225_v42 = vpop.f32.mrb[7].mxu0  ;;  %284 = vst [vmem:[#allocation7 + $0x78] sm:$0xff] %v441_v41  ;;  %v257_v43 = vpop.f32.mrb[7].mxu1 }
 0x127   :  { %v325_v44 = vadd.f32 %v324_v39, %v310_v38  ;;  %274 = vst [vmem:[#allocation7 + $0x28] sm:$0xff] %v225_v42  ;;  %v289_v45 = vadd.f32 %v288_v37, %v225_v42  ;;  %v311_v46 = vmul.f32 %v225_v42, %v225_v42  ;;  %282 = vst [vmem:[#allocation7 + $0x68] sm:$0xff] %v257_v43 }
 0x128   :  { %537 = shalt.err (!%p534_p6)
}
 0x129   :  { %s538_s14 = scalar_lea.hbm %s674_s2, 2048 }
 0x12a   :  { %p539_p7 = scmp.ne.s32.totalorder %s674_s2, %s538_s14  ;;  %p542_p8 = scmp.lt.u32.totalorder %s538_s14, %s674_s2 }
 0x12c   :  { %p544_p9 = pnand %p542_p8, %p539_p7 }
 0x12e   :  { %547 = shalt.err (!%p544_p9)
}
 0x12f   :  { %s583_s19 = smov 128   ;;  %s584_s20 = smov 8   ;;  %v312_v47 = vmul.f32 %v432_v32, %v432_v32  ;;  %v290_v48 = vadd.f32 %v432_v32, %v289_v45  ;;  %v326_v49 = vadd.f32 %v325_v44, %v311_v46  ;;  %v313_v50 = vmul.f32 %v433_v40, %v433_v40 }
 0x130   :  { %357 = dma.vmem_to_hbm [thread:$0]  %s352_s10, 2048, %s674_s2, [#allocation4], %s583_s19, %s583_s19, %s584_s20   ;;  %v314_v53 = vmul.f32 %v633_v19, %v633_v19  ;;  %v315_v58 = vmul.f32 %v241_v23, %v241_v23  ;;  %v316_v59 = vmul.f32 %v630_v17, %v630_v17  ;;  %v317_v62 = vmul.f32 %v636_v21, %v636_v21 }
 0x131   :  { %v327_v51 = vadd.f32 %v326_v49, %v312_v47  ;;  %v291_v52 = vadd.f32 %v433_v40, %v290_v48  ;;  %v318_v1 = vmul.f32 %v254_v36, %v254_v36  ;;  %v319_v6 = vmul.f32 %v257_v43, %v257_v43  ;;  %s585_s2 = smov [#allocation8]  }
 0x132   :  { %v320_v7 = vmul.f32 %v440_v34, %v440_v34  ;;  %v321_v10 = vmul.f32 %v441_v41, %v441_v41  ;;  %s364_s23 = sshll.u32 %s585_s2, 4  ;;  %vm343_vm0 = vcmask 1040384   ;;  %s365_s23 = int_to_ptr.vmem [resolvable:$true] %s364_s23 }
 0x133   :  { %v292_v54 = vadd.f32 %v291_v52, %v633_v19  ;;  %v328_v55 = vadd.f32 %v327_v51, %v313_v50  ;;  %s548_s24 = scalar_lea.vmem %s365_s23, 32  ;;  %p553_p11 = scmp.lt.s32.totalorder %s365_s23, %s365_s23 }
 0x134   :  { %p549_p10 = scmp.ne.s32.totalorder %s365_s23, %s548_s24  ;;  %p554_p12 = scmp.lt.s32.totalorder %s548_s24, %s548_s24 }
 0x135   :  { %v329_v56 = vadd.f32 %v328_v55, %v314_v53  ;;  %v293_v57 = vadd.f32 %v292_v54, %v241_v23 }
 0x136   :  { %p555_p13 = por %p554_p12, %p553_p11 }
 0x137   :  { %v294_v60 = vadd.f32 %v630_v17, %v293_v57  ;;  %v330_v61 = vadd.f32 %v329_v56, %v315_v58 }
 0x138   :  { %p556_p0 = pnand %p555_p13, %p549_p10 }
 0x139   :  { %v331_v63 = vadd.f32 %v330_v61, %v316_v59  ;;  %v295_v0 = vadd.f32 %v636_v21, %v294_v60 }
 0x13b   :  { %v296_v2 = vadd.f32 %v295_v0, %v254_v36  ;;  %v332_v3 = vadd.f32 %v331_v63, %v317_v62 }
 0x13d   :  { %v333_v4 = vadd.f32 %v332_v3, %v318_v1  ;;  %v297_v5 = vadd.f32 %v296_v2, %v257_v43 }
 0x13f   :  { %v298_v8 = vadd.f32 %v440_v34, %v297_v5  ;;  %v334_v9 = vadd.f32 %v333_v4, %v319_v6 }
 0x141   :  { %v299_v11 = vadd.f32 %v441_v41, %v298_v8  ;;  %v335_v12 = vadd.f32 %v334_v9, %v320_v7 }
 0x143   :  { %v300_v13 = vrot.slane %v299_v11, 4  ;;  %v336_v14 = vadd.f32 %v335_v12, %v321_v10 }
 0x145   :  { %v301_v15 = vadd.f32 %v300_v13, %v299_v11  ;;  %v337_v16 = vrot.slane %v336_v14, 4 }
 0x147   :  { %v302_v17 = vrot.slane %v301_v15, 2  ;;  %v338_v18 = vadd.f32 %v337_v16, %v336_v14 }
 0x149   :  { %v303_v19 = vadd.f32 %v302_v17, %v301_v15  ;;  %v339_v20 = vrot.slane %v338_v18, 2 }
 0x14b   :  { %v304_v21 = vrot.slane %v303_v19, 1  ;;  %v340_v22 = vadd.f32 %v339_v20, %v338_v18 }
 0x14d   :  { %v341_v23 = vrot.slane %v340_v22, 1  ;;  %v305_v24 = vadd.f32 %v304_v21, %v303_v19 }
 0x14f   :  { %v342_v25 = vadd.f32 %v341_v23, %v340_v22 }
 0x151   :  { %v344_v26 = vsel %vm343_vm0, %v305_v24, %v342_v25 }
 0x152   :  { %345 = vst [vmem:[#allocation8] sm:$0x3] %v344_v26 }
 0x153   :  { %559 = shalt.err (!%p556_p0)
}
 0x154   :  { %s560_s27 = scalar_lea.hbm %s675_s3, 32 }
 0x155   :  { %p561_p1 = scmp.ne.s32.totalorder %s675_s3, %s560_s27  ;;  %p564_p2 = scmp.lt.u32.totalorder %s560_s27, %s675_s3 }
 0x157   :  { %p566_p3 = pnand %p564_p2, %p561_p1 }
 0x159   :  { %569 = shalt.err (!%p566_p3)
}
 0x15a   :  { %367 = dma.vmem_to_hbm [thread:$0]  %s365_s23, 32, %s675_s3, [#allocation9]  }
 0x15b   :  { %574 = dma.done.wait [#allocation4], 2048  }
 0x15c   :  { %575 = vsyncadd [#allocation4], 4294965248 }
 0x15d   :  { %576 = dma.done.wait [#allocation9], 32  }
 0x15e   :  { %577 = vsyncadd [#allocation9], 4294967264 }
 0x15f   :  { %374 = vsyncpa [#allocation3], 1 }
 0x160   :  { %375 = vsyncpa [#allocation6], 1 }
 0x161   :  { %376 = vsyncpa [#allocation4], 1 }
 0x162   :  { %377 = vsyncpa [#allocation9], 1 }

</bundles_post_ra>
